<compile_context>
chip_gen: v7x
topology: tpu7x:2x2x1
jax: 0.10.0
libtpu: 0.0.40
codegen_flags: <defaults>
</compile_context>

<pallas_src>
import jax
import jax.numpy as jnp
from jax.experimental import pallas as pl
from jax.experimental.pallas import tpu as pltpu


def _dispact_kernel(x_ref, o_ref):
    x = x_ref[...]
    # PyTorch F.softplus (beta=1, threshold=20): x if x > 20 else log1p(exp(x))
    # The minimum() guard keeps exp() from overflowing on the dead branch.
    sp = jnp.where(x > 20.0, x, jnp.log1p(jnp.exp(jnp.minimum(x, 20.0))))
    # torch.clamp(sp, min=1e-4, max=1e4)
    o_ref[...] = jnp.clip(sp, 1e-4, 1e4)


def dispact(x, *, tile_rows=2048, lane=128):
    """Apply DispAct elementwise. x: any shape, float32."""
    orig_shape = x.shape
    n = x.size

    # Pad only to a multiple of 128 lanes (not tile_rows*lane) so that for the
    # common case (n % 128 == 0) there is NO extra HBM copy at all.
    n_pad = (-n) % lane
    xf = jnp.ravel(x)
    if n_pad:
        xf = jnp.concatenate([xf, jnp.zeros((n_pad,), x.dtype)])
    rows = xf.size // lane
    x2 = xf.reshape(rows, lane)

    # ~1 MiB blocks (2048 x 128 f32). For small inputs, shrink the block to the
    # full slab (block_shape equal to the array dim is always legal).
    tr = rows if rows <= tile_rows else tile_rows
    grid = (pl.cdiv(rows, tr),)  # last block may be partial — fine (elementwise)

    out2 = pl.pallas_call(
        _dispact_kernel,
        out_shape=jax.ShapeDtypeStruct((rows, lane), x.dtype),
        grid_spec=pl.GridSpec(
            grid=grid,
            in_specs=[pl.BlockSpec((tr, lane), lambda i: (i, 0))],
            out_specs=pl.BlockSpec((tr, lane), lambda i: (i, 0)),
        ),
        compiler_params=pltpu.CompilerParams(
            dimension_semantics=("parallel",),  # megacore sharding on v7x
        ),
    )(x2)

    out_flat = out2.reshape(-1)
    if n_pad:
        out_flat = out_flat[:n]
    return out_flat.reshape(orig_shape)


def _reference(x):
    sp = jnp.where(x > 20.0, x, jnp.log1p(jnp.exp(jnp.minimum(x, 20.0))))
    return jnp.clip(sp, 1e-4, 1e4)


if __name__ == "__main__":
    key = jax.random.PRNGKey(0)
    # Small shape consistent with a generic activation over an NCHW tensor.
    x = jax.random.normal(key, (2, 4, 16, 16), dtype=jnp.float32) * 10.0

    y = dispact(x)
    jax.block_until_ready(y)

    y_ref = _reference(x)
    assert y.shape == x.shape and y.dtype == x.dtype
    assert jnp.allclose(y, y_ref, rtol=1e-6, atol=1e-6)

    # Also exercise a size that is NOT a multiple of 128 (partial-lane tail)
    # and a size large enough to use multiple grid steps.
    x2 = jax.random.normal(jax.random.PRNGKey(1), (3, 5, 7, 11), dtype=jnp.float32) * 10.0
    y2 = dispact(x2)
    jax.block_until_ready(y2)
    assert jnp.allclose(y2, _reference(x2), rtol=1e-6, atol=1e-6)

    x3 = jax.random.normal(jax.random.PRNGKey(2), (4, 8, 64, 64), dtype=jnp.float32) * 10.0
    y3 = dispact(x3, tile_rows=512)  # forces a multi-step grid at small scale
    jax.block_until_ready(y3)
    assert jnp.allclose(y3, _reference(x3), rtol=1e-6, atol=1e-6)

    print("KERNEL_OK")
</pallas_src>

<mosaic_0001>
module attributes {stable_mosaic.version = 11 : i64} {
  func.func @_dispact_kernel(%arg0: i32, %arg1: memref<16x128xf32, #tpu.memory_space<vmem>>, %arg2: memref<16x128xf32, #tpu.memory_space<vmem>>) attributes {dimension_semantics = [#tpu.dimension_semantics<parallel>], iteration_bounds = array<i64: 1>, scalar_prefetch = 0 : i64, scratch_operands = 0 : i64, tpu.core_type = #tpu.core_type<tc>, window_params = [{transform_indices = @transform_0, window_bounds = array<i64: 16, 128>}, {transform_indices = @transform_1, window_bounds = array<i64: 16, 128>}]} {
    %c0 = arith.constant 0 : index
    %c0_0 = arith.constant 0 : index
    %0 = vector.load %arg1[%c0, %c0_0] : memref<16x128xf32, #tpu.memory_space<vmem>>, vector<16x128xf32>
    %cst = arith.constant 2.000000e+01 : f32
    %1 = vector.broadcast %cst : f32 to vector<16x128xf32>
    %2 = arith.cmpf ogt, %0, %1 : vector<16x128xf32>
    %cst_1 = arith.constant 2.000000e+01 : f32
    %3 = vector.broadcast %cst_1 : f32 to vector<16x128xf32>
    %4 = arith.minimumf %0, %3 : vector<16x128xf32>
    %5 = math.exp %4 : vector<16x128xf32>
    %6 = math.log1p %5 : vector<16x128xf32>
    %7 = arith.select %2, %0, %6 : vector<16x128xi1>, vector<16x128xf32>
    %cst_2 = arith.constant 9.99999974E-5 : f32
    %cst_3 = arith.constant 1.000000e+04 : f32
    %8 = vector.broadcast %cst_2 : f32 to vector<16x128xf32>
    %9 = arith.maximumf %8, %7 : vector<16x128xf32>
    %10 = vector.broadcast %cst_3 : f32 to vector<16x128xf32>
    %11 = arith.minimumf %10, %9 : vector<16x128xf32>
    %c0_4 = arith.constant 0 : index
    %c0_5 = arith.constant 0 : index
    %12 = vector.load %arg2[%c0_4, %c0_5] : memref<16x128xf32, #tpu.memory_space<vmem>>, vector<16x128xf32>
    tpu.vector_store %arg2[%c0_4, %c0_5], %11 {strides = array<i32>} : memref<16x128xf32, #tpu.memory_space<vmem>>, vector<16x128xf32>,
    return
  }
  func.func @transform_0(%arg0: i32) -> (i32, i32) {
    %c0_i32 = arith.constant 0 : i32
    %c0_i32_0 = arith.constant 0 : i32
    return %arg0, %c0_i32 : i32, i32
  }
  func.func @transform_1(%arg0: i32) -> (i32, i32) {
    %c0_i32 = arith.constant 0 : i32
    %c0_i32_0 = arith.constant 0 : i32
    return %arg0, %c0_i32 : i32, i32
  }
}

</mosaic_0001>

<bundles_post_ra>
// kernel: tpu_custom_call.1
= control target key start
LH: loop header
LB: loop body
LE: loop exit
PB: predicated region body
PF: predicated region fallthrough
CT: control target
= control target key end

     0   :  { %6 = vsyncpa [#allocation3], 0  ;;  %s180_s0 = inlined_call_operand.hbm [shape: f32[16,128], index: 0, kind: input, shape index: {}]   ;;  %s181_s1 = inlined_call_operand.hbm [shape: f32[16,128], index: 1, kind: output, shape index: {}]  }
   0x1   :  { %7 = vsyncpa [#allocation4], 0  ;;  %s136_s6 = smov [#allocation2]   ;;  %s88_s10 = scalar_lea.hbm %s180_s0, 256 }
   0x2   :  { %s13_s7 = sshll.u32 %s136_s6, 4  ;;  %p89_p0 = scmp.ne.s32.totalorder %s180_s0, %s88_s10  ;;  %s14_s7 = int_to_ptr.vmem [resolvable:$true] %s13_s7 }
   0x3   :  { %p92_p1 = scmp.lt.u32.totalorder %s88_s10, %s180_s0 }
   0x5   :  { %p94_p2 = pnand %p92_p1, %p89_p0 }
   0x7   :  { %97 = shalt.err (!%p94_p2)
}
   0x8   :  { %s98_s15 = scalar_lea.vmem %s14_s7, 256  ;;  %p103_p4 = scmp.lt.s32.totalorder %s14_s7, %s14_s7 }
   0x9   :  { %p99_p3 = scmp.ne.s32.totalorder %s14_s7, %s98_s15  ;;  %p104_p5 = scmp.lt.s32.totalorder %s98_s15, %s98_s15 }
   0xb   :  { %p105_p6 = por %p104_p5, %p103_p4 }
   0xd   :  { %p106_p7 = pnand %p105_p6, %p99_p3 }
   0xf   :  { %109 = shalt.err (!%p106_p7)
}
  0x10   :  { %s137_s16 = smov 128   ;;  %s138_s17 = smov 8  }
  0x11   :  { %19 = dma.hbm_to_vmem [thread:$0]  %s180_s0, 256, %s14_s7, [#allocation3], %s137_s16, %s137_s16, %s138_s17  }
  0x12   :  { %132 = dma.done.wait [#allocation3], 256  }
  0x13   :  { %133 = vsyncadd [#allocation3], 4294967040  ;;  %v23_v0 = vld [vmem:[#allocation2] sm:$0xff]  ;;  %v24_v1 = vld [vmem:[#allocation2 + $0x8] sm:$0xff]  ;;  %s139_s0 = smov [#allocation5]  }
  0x14   :  { %v27_v2 = vmin.f32 %v23_v0, 20.0  ;;  %v28_v3 = vmin.f32 %v24_v1, 20.0  ;;  %vm25_vm1 = vcmp.gt.f32.partialorder %v23_v0, 20.0  ;;  %vm26_vm3 = vcmp.gt.f32.partialorder %v24_v1, 20.0  ;;  %s64_s20 = sshll.u32 %s139_s0, 4  ;;  %s65_s20 = int_to_ptr.vmem [resolvable:$true] %s64_s20 }
  0x15   :  { %s110_s21 = scalar_lea.vmem %s65_s20, 256  ;;  %p115_p9 = scmp.lt.s32.totalorder %s65_s20, %s65_s20 }
  0x16   :  { %v29_v4 = vmul.f32 1.442695, %v27_v2  ;;  %v31_v5 = vmul.f32 1.442695, %v28_v3  ;;  %p111_p8 = scmp.ne.s32.totalorder %s65_s20, %s110_s21  ;;  %p116_p10 = scmp.lt.s32.totalorder %s110_s21, %s110_s21 }
  0x18   :  { %80 = vpow2.f32 %v29_v4  ;;  %p117_p11 = por %p116_p10, %p115_p9 }
  0x19   :  { %82 = vpow2.f32 %v31_v5 }
  0x1a   :  { %p118_p12 = pnand %p117_p11, %p111_p8 }
  0x22   :  { %v81_v6 = vpop.eup %80 }
  0x23   :  { %v83_v7 = vpop.eup %82  ;;  %v33_v8 = vadd.f32 1.0, %v81_v6  ;;  %v36_v10 = vmul.f32 -0.5, %v81_v6  ;;  %v39_v13 = vand.u32 2147483647, %v81_v6 }
  0x24   :  { %v42_v9 = vadd.f32 1.0, %v83_v7  ;;  %v45_v11 = vmul.f32 -0.5, %v83_v7  ;;  %v48_v15 = vand.u32 2147483647, %v83_v7 }
  0x25   :  { %84 = vlog2.f32 %v33_v8  ;;  %v37_v12 = vadd.f32 1.0, %v36_v10  ;;  %vm40_vm0 = vcmp.lt.f32.partialorder %v39_v13, 0.0004427343 }
  0x26   :  { %86 = vlog2.f32 %v42_v9  ;;  %v46_v14 = vadd.f32 1.0, %v45_v11  ;;  %vm49_vm2 = vcmp.lt.f32.partialorder %v48_v15, 0.0004427343 }
  0x27   :  { %v38_v16 = vmul.f32 %v81_v6, %v37_v12 }
  0x28   :  { %v47_v18 = vmul.f32 %v83_v7, %v46_v14 }
  0x2f   :  { %v85_v17 = vpop.eup %84 }
  0x30   :  { %v87_v19 = vpop.eup %86  ;;  %v35_v20 = vmul.f32 0.6931472, %v85_v17 }
  0x31   :  { %v44_v21 = vmul.f32 0.6931472, %v87_v19 }
  0x32   :  { %v41_v22 = vsel %vm40_vm0, %v38_v16, %v35_v20 }
  0x33   :  { %v51_v23 = vsel %vm25_vm1, %v23_v0, %v41_v22  ;;  %v50_v24 = vsel %vm49_vm2, %v47_v18, %v44_v21 }
  0x34   :  { %v53_v25 = vmax.f32 %v51_v23, 0.0001  ;;  %v52_v26 = vsel %vm26_vm3, %v24_v1, %v50_v24 }
  0x35   :  { %v54_v27 = vmax.f32 %v52_v26, 0.0001 }
  0x36   :  { %v55_v28 = vmin.f32 %v53_v25, 10000.0 }
  0x37   :  { %v56_v29 = vmin.f32 %v54_v27, 10000.0 }
  0x38   :  { %57 = vst [vmem:[#allocation5] sm:$0xff] %v55_v28 }
  0x39   :  { %58 = vst [vmem:[#allocation5 + $0x8] sm:$0xff] %v56_v29 }
  0x3a   :  { %121 = shalt.err (!%p118_p12)
}
  0x3b   :  { %s122_s24 = scalar_lea.hbm %s181_s1, 256 }
  0x3c   :  { %p123_p13 = scmp.ne.s32.totalorder %s181_s1, %s122_s24  ;;  %p126_p0 = scmp.lt.u32.totalorder %s122_s24, %s181_s1 }
  0x3e   :  { %p128_p1 = pnand %p126_p0, %p123_p13 }
  0x40   :  { %131 = shalt.err (!%p128_p1)
}
  0x41   :  { %70 = dma.vmem_to_hbm [thread:$0]  %s65_s20, 256, %s181_s1, [#allocation4], %s137_s16, %s137_s16, %s138_s17  }
  0x42   :  { %134 = dma.done.wait [#allocation4], 256  }
  0x43   :  { %135 = vsyncadd [#allocation4], 4294967040 }
  0x44   :  { %74 = vsyncpa [#allocation3], 1 }
  0x45   :  { %75 = vsyncpa [#allocation4], 1 }

</bundles_post_ra>
